<compile_context>
chip_gen: v7x
topology: tpu7x:2x2x1
jax: 0.10.0
libtpu: 0.0.40
codegen_flags: <defaults>
</compile_context>

<pallas_src>
import functools

import numpy as np
import jax
import jax.numpy as jnp
from jax.experimental import pallas as pl


# ---------------------------------------------------------------------------
# Pallas kernel: validate_boxes (drop_if_missing=True semantics)
# ---------------------------------------------------------------------------
def _validate_boxes_kernel(boxes_ref, out_boxes_ref, keep_ref, *,
                           width, height, min_w, min_h, p_drop):
    b = boxes_ref[...]                         # (4, Np) f32, rows = x0,y0,x1,y1
    x0 = b[0:1, :]
    y0 = b[1:2, :]
    x1 = b[2:3, :]
    y1 = b[3:4, :]

    w = jnp.float32(width)
    h = jnp.float32(height)

    # Stage 1: boxes entirely outside the image.
    invalid1 = (x0 > w) | (x1 < 0.0) | (y0 > h) | (y1 < 0.0)

    # Stage 2 (drop_if_missing=True): out-of-frame fraction > p_drop along
    # either axis.  Multiply form (no f32 divide); the (bw > 0)/(bh > 0) guard
    # reproduces the reference behaviour for degenerate boxes (0/0 -> NaN and
    # x/neg ratios compare False there, i.e. stage 2 never drops them).
    bw = x1 - x0
    bh = y1 - y0
    over_l = jnp.maximum(0.0 - x0, 0.0)
    over_t = jnp.maximum(0.0 - y0, 0.0)
    over_r = jnp.maximum(x1 - w, 0.0)
    over_b = jnp.maximum(y1 - h, 0.0)
    invalid2 = (((over_l > p_drop * bw) | (over_r > p_drop * bw)) & (bw > 0.0)) \
             | (((over_t > p_drop * bh) | (over_b > p_drop * bh)) & (bh > 0.0))

    # Stage 3: clamp to the image frame via a whole-tensor broadcast clamp
    # (rows 0,1 clamp low at 0; rows 2,3 clamp high at w/h).  Single store.
    row = jax.lax.broadcasted_iota(jnp.int32, b.shape, 0)
    low = jnp.where(row < 2, jnp.float32(0.0), jnp.float32(-jnp.inf))
    high = jnp.where(row < 2, jnp.float32(jnp.inf),
                     jnp.where(row == 2, w, h))
    clamped = jnp.minimum(jnp.maximum(b, low), high)

    # Stage 4: minimum-size test on the clamped boxes.
    invalid3 = ((clamped[2:3, :] - clamped[0:1, :]) < min_w) \
             | ((clamped[3:4, :] - clamped[1:2, :]) < min_h)

    keep = jnp.logical_not(invalid1 | invalid2 | invalid3)   # (1, Np)

    out_boxes_ref[...] = clamped
    keep_ref[...] = keep.astype(jnp.int32)


# ---------------------------------------------------------------------------
# Wrappers
# ---------------------------------------------------------------------------
def validate_boxes_pallas(boxes, width, height, min_w=2.0, min_h=2.0,
                          p_drop=0.25):
    """Returns (clamped_boxes[N,4] f32, keep_mask[N] bool) from a Pallas kernel.

    Boxes are presented to the kernel transposed and lane-padded: (4, N_pad)
    with N_pad a multiple of 128, so every compare/select/store is full-width.
    """
    N = boxes.shape[0]
    Np = max(128, ((N + 127) // 128) * 128)

    boxes_t = jnp.zeros((4, Np), jnp.float32)
    boxes_t = boxes_t.at[:, :N].set(jnp.asarray(boxes, jnp.float32).T)

    kernel = functools.partial(
        _validate_boxes_kernel,
        width=float(width), height=float(height),
        min_w=float(min_w), min_h=float(min_h), p_drop=float(p_drop),
    )
    clamped_t, keep = pl.pallas_call(
        kernel,
        out_shape=(
            jax.ShapeDtypeStruct((4, Np), jnp.float32),
            jax.ShapeDtypeStruct((1, Np), jnp.int32),
        ),
        grid=(1,),
        in_specs=[pl.BlockSpec((4, Np), lambda i: (0, 0))],
        out_specs=(
            pl.BlockSpec((4, Np), lambda i: (0, 0)),
            pl.BlockSpec((1, Np), lambda i: (0, 0)),
        ),
    )(boxes_t)

    clamped = clamped_t[:, :N].T                 # back to (N, 4)
    keep_mask = keep[0, :N].astype(bool)         # (N,)
    return clamped, keep_mask


def albumentation_wrapper_forward(image, target, min_area=512,
                                  min_visibility=0.3):
    """Forward pass of AlbumentationWrapper.

    image : (H, W, C) uint8 jnp array
    target: dict with 'boxes' (N,4) float32 and 'labels' (N,) int32
    Returns (out_image, target) with boxes/labels filtered & clamped,
    matching validate_boxes(..., drop_if_missing=True) semantics.
    """
    del min_area, min_visibility  # consumed by albumentations (identity here)
    # TODO(synk): real albumentations augmentations (random crop/flip/color,
    # PIL round-trip) are host-side stochastic CPU-library ops with no TPU
    # equivalent; the image passes through unchanged (no copy kernel).
    out_image = image
    H, W, _ = image.shape

    clamped, keep = validate_boxes_pallas(target["boxes"], width=W, height=H)

    # Device-side compaction: stable sort kept rows to the front, then slice.
    # Only a single scalar device->host sync (the valid count) is required;
    # a fully dynamic output shape has no static-shape TPU equivalent.
    order = jnp.argsort(jnp.logical_not(keep), stable=True)
    boxes_sorted = clamped[order]
    labels_sorted = jnp.asarray(target["labels"])[order]
    n_valid = int(jnp.sum(keep))                 # scalar sync

    target = dict(target)
    target["boxes"] = boxes_sorted[:n_valid]
    target["labels"] = labels_sorted[:n_valid]
    return out_image, target


# ---------------------------------------------------------------------------
# Reference (pure numpy) for sanity check
# ---------------------------------------------------------------------------
def _validate_boxes_ref(boxes, labels, width, height, min_w=2, min_h=2,
                        p_drop=0.25):
    boxes = boxes.copy()
    inv = (boxes[:, 0] > width) | (boxes[:, 2] < 0) | \
          (boxes[:, 1] > height) | (boxes[:, 3] < 0)
    boxes = boxes[~inv]; labels = labels[~inv]
    bw = boxes[:, 2] - boxes[:, 0]; bh = boxes[:, 3] - boxes[:, 1]
    p0w = np.maximum(0 - boxes[:, 0], 0) / bw
    p0h = np.maximum(0 - boxes[:, 1], 0) / bh
    pww = np.maximum(boxes[:, 2] - width, 0) / bw
    phh = np.maximum(boxes[:, 3] - height, 0) / bh
    inv = (p0h > p_drop) | (p0w > p_drop) | (phh > p_drop) | (pww > p_drop)
    boxes = boxes[~inv]; labels = labels[~inv]
    boxes[:, 0] = np.maximum(boxes[:, 0], 0.0)
    boxes[:, 1] = np.maximum(boxes[:, 1], 0.0)
    boxes[:, 2] = np.minimum(boxes[:, 2], float(width))
    boxes[:, 3] = np.minimum(boxes[:, 3], float(height))
    inv = (boxes[:, 2] - boxes[:, 0] < min_w) | (boxes[:, 3] - boxes[:, 1] < min_h)
    return boxes[~inv], labels[~inv]


# ---------------------------------------------------------------------------
if __name__ == "__main__":
    key = jax.random.PRNGKey(0)
    k_img, k_box = jax.random.split(key)

    H, W, C = 16, 16, 3
    N = 8

    image = jax.random.randint(k_img, (H, W, C), 0, 256, dtype=jnp.int32)
    image = image.astype(jnp.uint8)

    # Deterministic boxes covering in-bounds, partially out, and fully out cases.
    boxes = jnp.array(
        [
            [2.0, 3.0, 10.0, 12.0],    # fully inside -> keep
            [-1.0, 1.0, 7.0, 9.0],     # slightly out left (ratio < 0.25) -> keep, clamp
            [-6.0, 2.0, 6.0, 10.0],    # half out left (ratio > 0.25) -> drop
            [20.0, 2.0, 30.0, 10.0],   # fully right of image -> drop
            [4.0, -5.0, 12.0, 3.0],    # mostly above (ratio > 0.25) -> drop
            [1.0, 1.0, 2.5, 14.0],     # too narrow after clamp (<2) -> drop
            [3.0, 14.0, 13.0, 20.0],   # hangs below, ratio > 0.25 -> drop
            [5.0, 5.0, 15.0, 15.5],    # fully inside -> keep
        ],
        dtype=jnp.float32,
    ) + 0.0 * jax.random.normal(k_box, (N, 4))   # key consumed deterministically

    labels = jnp.arange(N, dtype=jnp.int32)
    target = {"boxes": boxes, "labels": labels}

    out_image, out_target = albumentation_wrapper_forward(image, target)
    jax.block_until_ready(out_image)
    jax.block_until_ready(out_target["boxes"])
    jax.block_until_ready(out_target["labels"])

    # Cross-check against a pure-numpy reference of validate_boxes.
    ref_boxes, ref_labels = _validate_boxes_ref(
        np.asarray(boxes), np.asarray(labels), W, H
    )
    np.testing.assert_allclose(np.asarray(out_target["boxes"]), ref_boxes,
                               rtol=1e-6, atol=1e-6)
    np.testing.assert_array_equal(np.asarray(out_target["labels"]), ref_labels)
    np.testing.assert_array_equal(np.asarray(out_image), np.asarray(image))

    print("KERNEL_OK")
</pallas_src>

<mosaic_0001>
module attributes {stable_mosaic.version = 11 : i64} {
  func.func @_validate_boxes_kernel(%arg0: i32, %arg1: memref<4x128xf32, #tpu.memory_space<vmem>>, %arg2: memref<4x128xf32, #tpu.memory_space<vmem>>, %arg3: memref<1x128xi32, #tpu.memory_space<vmem>>) attributes {dimension_semantics = [#tpu.dimension_semantics<arbitrary>], iteration_bounds = array<i64: 1>, scalar_prefetch = 0 : i64, scratch_operands = 0 : i64, tpu.core_type = #tpu.core_type<tc>, window_params = [{pipeline_mode = #tpu.pipeline_mode<synchronous>, transform_indices = @transform_0, window_bounds = array<i64: 4, 128>}, {pipeline_mode = #tpu.pipeline_mode<synchronous>, transform_indices = @transform_1, window_bounds = array<i64: 4, 128>}, {pipeline_mode = #tpu.pipeline_mode<synchronous>, transform_indices = @transform_2, window_bounds = array<i64: 1, 128>}]} {
    %c0 = arith.constant 0 : index
    %c0_0 = arith.constant 0 : index
    %0 = vector.load %arg1[%c0, %c0_0] : memref<4x128xf32, #tpu.memory_space<vmem>>, vector<4x128xf32>
    %1 = vector.extract_strided_slice %0 {offsets = [0, 0], sizes = [1, 128], strides = [1, 1]} : vector<4x128xf32> to vector<1x128xf32>
    %2 = vector.extract_strided_slice %0 {offsets = [1, 0], sizes = [1, 128], strides = [1, 1]} : vector<4x128xf32> to vector<1x128xf32>
    %3 = vector.extract_strided_slice %0 {offsets = [2, 0], sizes = [1, 128], strides = [1, 1]} : vector<4x128xf32> to vector<1x128xf32>
    %4 = vector.extract_strided_slice %0 {offsets = [3, 0], sizes = [1, 128], strides = [1, 1]} : vector<4x128xf32> to vector<1x128xf32>
    %cst = arith.constant 1.600000e+01 : f32
    %5 = vector.broadcast %cst : f32 to vector<1x128xf32>
    %6 = arith.cmpf ogt, %1, %5 : vector<1x128xf32>
    %cst_1 = arith.constant 0.000000e+00 : f32
    %7 = vector.broadcast %cst_1 : f32 to vector<1x128xf32>
    %8 = arith.cmpf olt, %3, %7 : vector<1x128xf32>
    %9 = arith.ori %6, %8 : vector<1x128xi1>
    %cst_2 = arith.constant 1.600000e+01 : f32
    %10 = vector.broadcast %cst_2 : f32 to vector<1x128xf32>
    %11 = arith.cmpf ogt, %2, %10 : vector<1x128xf32>
    %12 = arith.ori %9, %11 : vector<1x128xi1>
    %cst_3 = arith.constant 0.000000e+00 : f32
    %13 = vector.broadcast %cst_3 : f32 to vector<1x128xf32>
    %14 = arith.cmpf olt, %4, %13 : vector<1x128xf32>
    %15 = arith.ori %12, %14 : vector<1x128xi1>
    %16 = arith.subf %3, %1 : vector<1x128xf32>
    %17 = arith.subf %4, %2 : vector<1x128xf32>
    %cst_4 = arith.constant 0.000000e+00 : f32
    %18 = vector.broadcast %cst_4 : f32 to vector<1x128xf32>
    %19 = arith.subf %18, %1 : vector<1x128xf32>
    %cst_5 = arith.constant 0.000000e+00 : f32
    %20 = vector.broadcast %cst_5 : f32 to vector<1x128xf32>
    %21 = arith.maximumf %19, %20 : vector<1x128xf32>
    %cst_6 = arith.constant 0.000000e+00 : f32
    %22 = vector.broadcast %cst_6 : f32 to vector<1x128xf32>
    %23 = arith.subf %22, %2 : vector<1x128xf32>
    %cst_7 = arith.constant 0.000000e+00 : f32
    %24 = vector.broadcast %cst_7 : f32 to vector<1x128xf32>
    %25 = arith.maximumf %23, %24 : vector<1x128xf32>
    %cst_8 = arith.constant 1.600000e+01 : f32
    %26 = vector.broadcast %cst_8 : f32 to vector<1x128xf32>
    %27 = arith.subf %3, %26 : vector<1x128xf32>
    %cst_9 = arith.constant 0.000000e+00 : f32
    %28 = vector.broadcast %cst_9 : f32 to vector<1x128xf32>
    %29 = arith.maximumf %27, %28 : vector<1x128xf32>
    %cst_10 = arith.constant 1.600000e+01 : f32
    %30 = vector.broadcast %cst_10 : f32 to vector<1x128xf32>
    %31 = arith.subf %4, %30 : vector<1x128xf32>
    %cst_11 = arith.constant 0.000000e+00 : f32
    %32 = vector.broadcast %cst_11 : f32 to vector<1x128xf32>
    %33 = arith.maximumf %31, %32 : vector<1x128xf32>
    %cst_12 = arith.constant 2.500000e-01 : f32
    %34 = vector.broadcast %cst_12 : f32 to vector<1x128xf32>
    %35 = arith.mulf %34, %16 : vector<1x128xf32>
    %36 = arith.cmpf ogt, %21, %35 : vector<1x128xf32>
    %cst_13 = arith.constant 2.500000e-01 : f32
    %37 = vector.broadcast %cst_13 : f32 to vector<1x128xf32>
    %38 = arith.mulf %37, %16 : vector<1x128xf32>
    %39 = arith.cmpf ogt, %29, %38 : vector<1x128xf32>
    %40 = arith.ori %36, %39 : vector<1x128xi1>
    %cst_14 = arith.constant 0.000000e+00 : f32
    %41 = vector.broadcast %cst_14 : f32 to vector<1x128xf32>
    %42 = arith.cmpf ogt, %16, %41 : vector<1x128xf32>
    %43 = arith.andi %40, %42 : vector<1x128xi1>
    %cst_15 = arith.constant 2.500000e-01 : f32
    %44 = vector.broadcast %cst_15 : f32 to vector<1x128xf32>
    %45 = arith.mulf %44, %17 : vector<1x128xf32>
    %46 = arith.cmpf ogt, %25, %45 : vector<1x128xf32>
    %cst_16 = arith.constant 2.500000e-01 : f32
    %47 = vector.broadcast %cst_16 : f32 to vector<1x128xf32>
    %48 = arith.mulf %47, %17 : vector<1x128xf32>
    %49 = arith.cmpf ogt, %33, %48 : vector<1x128xf32>
    %50 = arith.ori %46, %49 : vector<1x128xi1>
    %cst_17 = arith.constant 0.000000e+00 : f32
    %51 = vector.broadcast %cst_17 : f32 to vector<1x128xf32>
    %52 = arith.cmpf ogt, %17, %51 : vector<1x128xf32>
    %53 = arith.andi %50, %52 : vector<1x128xi1>
    %54 = arith.ori %43, %53 : vector<1x128xi1>
    %55 = tpu.iota {dimensions = array<i32: 0>} : vector<4x128xi32>
    %c2_i32 = arith.constant 2 : i32
    %56 = vector.broadcast %c2_i32 : i32 to vector<4x128xi32>
    %57 = arith.cmpi slt, %55, %56 : vector<4x128xi32>
    %cst_18 = arith.constant 0.000000e+00 : f32
    %cst_19 = arith.constant 0xFF800000 : f32
    %58 = vector.broadcast %cst_18 : f32 to vector<4x128xf32>
    %59 = vector.broadcast %cst_19 : f32 to vector<4x128xf32>
    %60 = arith.select %57, %58, %59 : vector<4x128xi1>, vector<4x128xf32>
    %c2_i32_20 = arith.constant 2 : i32
    %61 = vector.broadcast %c2_i32_20 : i32 to vector<4x128xi32>
    %62 = arith.cmpi slt, %55, %61 : vector<4x128xi32>
    %c2_i32_21 = arith.constant 2 : i32
    %63 = vector.broadcast %c2_i32_21 : i32 to vector<4x128xi32>
    %64 = arith.cmpi eq, %55, %63 : vector<4x128xi32>
    %cst_22 = arith.constant 1.600000e+01 : f32
    %cst_23 = arith.constant 1.600000e+01 : f32
    %65 = vector.broadcast %cst_22 : f32 to vector<4x128xf32>
    %66 = vector.broadcast %cst_23 : f32 to vector<4x128xf32>
    %67 = arith.select %64, %65, %66 : vector<4x128xi1>, vector<4x128xf32>
    %cst_24 = arith.constant 0x7F800000 : f32
    %68 = vector.broadcast %cst_24 : f32 to vector<4x128xf32>
    %69 = arith.select %62, %68, %67 : vector<4x128xi1>, vector<4x128xf32>
    %70 = arith.maximumf %0, %60 : vector<4x128xf32>
    %71 = arith.minimumf %70, %69 : vector<4x128xf32>
    %72 = vector.extract_strided_slice %71 {offsets = [2, 0], sizes = [1, 128], strides = [1, 1]} : vector<4x128xf32> to vector<1x128xf32>
    %73 = vector.extract_strided_slice %71 {offsets = [0, 0], sizes = [1, 128], strides = [1, 1]} : vector<4x128xf32> to vector<1x128xf32>
    %74 = arith.subf %72, %73 : vector<1x128xf32>
    %cst_25 = arith.constant 2.000000e+00 : f32
    %75 = vector.broadcast %cst_25 : f32 to vector<1x128xf32>
    %76 = arith.cmpf olt, %74, %75 : vector<1x128xf32>
    %77 = vector.extract_strided_slice %71 {offsets = [3, 0], sizes = [1, 128], strides = [1, 1]} : vector<4x128xf32> to vector<1x128xf32>
    %78 = vector.extract_strided_slice %71 {offsets = [1, 0], sizes = [1, 128], strides = [1, 1]} : vector<4x128xf32> to vector<1x128xf32>
    %79 = arith.subf %77, %78 : vector<1x128xf32>
    %cst_26 = arith.constant 2.000000e+00 : f32
    %80 = vector.broadcast %cst_26 : f32 to vector<1x128xf32>
    %81 = arith.cmpf olt, %79, %80 : vector<1x128xf32>
    %82 = arith.ori %76, %81 : vector<1x128xi1>
    %83 = arith.ori %15, %54 : vector<1x128xi1>
    %84 = arith.ori %83, %82 : vector<1x128xi1>
    %cst_27 = arith.constant dense<true> : vector<1x128xi1>
    %85 = arith.xori %84, %cst_27 : vector<1x128xi1>
    %c0_28 = arith.constant 0 : index
    %c0_29 = arith.constant 0 : index
    %86 = vector.load %arg2[%c0_28, %c0_29] : memref<4x128xf32, #tpu.memory_space<vmem>>, vector<4x128xf32>
    tpu.vector_store %arg2[%c0_28, %c0_29], %71 {strides = array<i32>} : memref<4x128xf32, #tpu.memory_space<vmem>>, vector<4x128xf32>,
    %87 = arith.extui %85 : vector<1x128xi1> to vector<1x128xi32>
    %c0_30 = arith.constant 0 : index
    %c0_31 = arith.constant 0 : index
    %88 = vector.load %arg3[%c0_30, %c0_31] : memref<1x128xi32, #tpu.memory_space<vmem>>, vector<1x128xi32>
    tpu.vector_store %arg3[%c0_30, %c0_31], %87 {strides = array<i32>} : memref<1x128xi32, #tpu.memory_space<vmem>>, vector<1x128xi32>,
    return
  }
  func.func @transform_0(%arg0: i32) -> (i32, i32) {
    %c0_i32 = arith.constant 0 : i32
    %c0_i32_0 = arith.constant 0 : i32
    %c0_i32_1 = arith.constant 0 : i32
    return %c0_i32, %c0_i32_0 : i32, i32
  }
  func.func @transform_1(%arg0: i32) -> (i32, i32) {
    %c0_i32 = arith.constant 0 : i32
    %c0_i32_0 = arith.constant 0 : i32
    %c0_i32_1 = arith.constant 0 : i32
    return %c0_i32, %c0_i32_0 : i32, i32
  }
  func.func @transform_2(%arg0: i32) -> (i32, i32) {
    %c0_i32 = arith.constant 0 : i32
    %c0_i32_0 = arith.constant 0 : i32
    %c0_i32_1 = arith.constant 0 : i32
    return %c0_i32, %c0_i32_0 : i32, i32
  }
}

</mosaic_0001>

<bundles_post_ra>
// kernel: tpu_custom_call.1
= control target key start
LH: loop header
LB: loop body
LE: loop exit
PB: predicated region body
PF: predicated region fallthrough
CT: control target
= control target key end

     0   :  { %8 = vsyncpa [#allocation3], 0  ;;  %s285_s0 = inlined_call_operand.hbm [shape: f32[4,128], index: 0, kind: input, shape index: {}]   ;;  %s286_s1 = inlined_call_operand.hbm [shape: f32[4,128], index: 1, kind: output, shape index: {0}]   ;;  %s287_s2 = inlined_call_operand.hbm [shape: s32[1,128], index: 2, kind: output, shape index: {1}]  }
   0x1   :  { %9 = vsyncpa [#allocation4], 0 }
   0x2   :  { %10 = vsyncpa [#allocation7], 0  ;;  %s199_s9 = smov [#allocation2]   ;;  %s127_s13 = scalar_lea.hbm %s285_s0, 64 }
   0x3   :  { %s17_s10 = sshll.u32 %s199_s9, 4  ;;  %p128_p0 = scmp.ne.s32.totalorder %s285_s0, %s127_s13  ;;  %s18_s10 = int_to_ptr.vmem [resolvable:$true] %s17_s10 }
   0x4   :  { %p131_p1 = scmp.lt.u32.totalorder %s127_s13, %s285_s0 }
   0x6   :  { %p133_p2 = pnand %p131_p1, %p128_p0 }
   0x8   :  { %136 = shalt.err (!%p133_p2)
}
   0x9   :  { %s137_s18 = scalar_lea.vmem %s18_s10, 64  ;;  %p142_p4 = scmp.lt.s32.totalorder %s18_s10, %s18_s10 }
   0xa   :  { %p138_p3 = scmp.ne.s32.totalorder %s18_s10, %s137_s18  ;;  %p143_p5 = scmp.lt.s32.totalorder %s137_s18, %s137_s18 }
   0xc   :  { %p144_p6 = por %p143_p5, %p142_p4 }
   0xe   :  { %p145_p7 = pnand %p144_p6, %p138_p3 }
  0x10   :  { %148 = shalt.err (!%p145_p7)
}
  0x11   :  { %20 = dma.hbm_to_vmem [thread:$0]  %s285_s0, 64, %s18_s10, [#allocation3]  }
  0x12   :  { %193 = dma.done.wait [#allocation3], 64  }
  0x13   :  { %194 = vsyncadd [#allocation3], 4294967232  ;;  %v65_v0 = vlaneseq  ;;  %v200_v2 = vmov -inf   ;;  %v24_v4 = vld [vmem:[#allocation2] sm:$0xf]  ;;  %v201_v5 = vmov 16.0  }
  0x14   :  { %s202_s21 = smov [#allocation5]   ;;  %vm25_vm1 = vcmp.gt.f32.partialorder %v24_v4, 16.0  ;;  %vm26_vm2 = vcmp.lt.f32.partialorder %v24_v4, 0.0  ;;  %v39_v8 = vrot.slane %v24_v4, 6  ;;  %v203_v9 = vmov 0  }
  0x15   :  { %v66_v1 = vshrl.u32 %v65_v0, 7  ;;  %s96_s22 = sshll.u32 %s202_s21, 4  ;;  %v27_v10 = vsel %vm26_vm2, 1, %v203_v9  ;;  %v31_v11 = vsel %vm25_vm1, 1, %v203_v9  ;;  %v42_v12 = vsub.f32 0.0, %v24_v4  ;;  %s97_s22 = int_to_ptr.vmem [resolvable:$true] %s96_s22 }
  0x16   :  { %v119_v13 = vadd.f32 -16.0, %v24_v4  ;;  %v28_v15 = vrot.slane %v27_v10, 2  ;;  %v41_v16 = vsub.f32 %v24_v4, %v39_v8  ;;  %v32_v19 = vrot.slane %v31_v11, 1  ;;  %s149_s0 = scalar_lea.vmem %s97_s22, 64  ;;  %p154_p9 = scmp.lt.s32.totalorder %s97_s22, %s97_s22 }
  0x17   :  { %vm67_vm0 = vcmp.lt.s32.totalorder %v66_v1, 2  ;;  %v43_v21 = vmax.f32 %v42_v12, 0.0  ;;  %p150_p8 = scmp.ne.s32.totalorder %s97_s22, %s149_s0  ;;  %p155_p10 = scmp.lt.s32.totalorder %s149_s0, %s149_s0 }
  0x18   :  { %v68_v3 = vsel %vm67_vm0, 0.0, %v200_v2  ;;  %v69_v6 = vsel %vm67_vm0, inf, %v201_v5  ;;  %v45_v17 = vmax.f32 %v119_v13, 0.0  ;;  %vm236_vm3 = vcmp.ne.s32.totalorder %v28_v15, 0 }
  0x19   :  { %v70_v7 = vmax.f32 %v24_v4, %v68_v3  ;;  %v46_v22 = vmul.f32 0.25, %v41_v16  ;;  %vm56_vm4 = vcmp.gt.f32.partialorder %v41_v16, 0.0  ;;  %p156_p11 = por %p155_p10, %p154_p9 }
  0x1b   :  { %v71_v14 = vmin.f32 %v70_v7, %v69_v6  ;;  %p157_p12 = pnand %p156_p11, %p150_p8 }
  0x1d   :  { %v73_v18 = vrot.slane %v71_v14, 6  ;;  %87 = vst [vmem:[#allocation5] sm:$0xf] %v71_v14 }
  0x1e   :  { %160 = shalt.err (!%p157_p12)
}
  0x1f   :  { %s161_s25 = scalar_lea.hbm %s286_s1, 64 }
  0x20   :  { %p162_p13 = scmp.ne.s32.totalorder %s286_s1, %s161_s25  ;;  %p165_p0 = scmp.lt.u32.totalorder %s161_s25, %s286_s1 }
  0x22   :  { %p167_p1 = pnand %p165_p0, %p162_p13 }
  0x24   :  { %170 = shalt.err (!%p167_p1)
}
  0x25   :  { %99 = dma.vmem_to_hbm [thread:$0]  %s97_s22, 64, %s286_s1, [#allocation4]   ;;  %v57_v23 = vsel %vm56_vm4, 1, %v203_v9  ;;  %v75_v24 = vsub.f32 %v71_v14, %v73_v18  ;;  %v48_v25 = vrot.slane %v46_v22, 2  ;;  %vm51_vm5 = vcmp.gt.f32.partialorder %v45_v17, %v46_v22  ;;  %vm256_vm6 = vmor %vm25_vm1, %vm236_vm3 }
  0x26   :  { %v58_v26 = vrot.slane %v57_v23, 2  ;;  %vm260_vm7 = vcmp.ne.s32.totalorder %v32_v19, 0  ;;  %v52_v29 = vsel %vm51_vm5, 1, %v203_v9  ;;  %v35_v30 = vrot.slane %v27_v10, 3  ;;  %s204_s1 = smov [#allocation6]  }
  0x27   :  { %vm76_vm8 = vcmp.lt.f32.partialorder %v75_v24, 2.0  ;;  %vm50_vm9 = vcmp.gt.f32.partialorder %v43_v21, %v48_v25  ;;  %v53_v31 = vrot.slane %v52_v29, 2  ;;  %vm34_vm11 = vmor %vm256_vm6, %vm260_vm7  ;;  %s106_s4 = sshll.u32 %s204_s1, 4  ;;  %s107_s4 = int_to_ptr.vmem [resolvable:$true] %s106_s4 }
  0x28   :  { %v77_v32 = vsel %vm76_vm8, 1, %v203_v9  ;;  %vm59_vm10 = vcmp.ne.s32.totalorder %v58_v26, 0  ;;  %vm36_vm15 = vcmp.ne.s32.totalorder %v35_v30, 0  ;;  %s171_s5 = scalar_lea.vmem %s107_s4, 16  ;;  %s175_s6 = scalar_lea.vmem %s107_s4, 32 }
  0x29   :  { %v78_v33 = vrot.slane %v77_v32, 1  ;;  %vm54_vm12 = vcmp.ne.s32.totalorder %v53_v31, 0  ;;  %vm37_vm2 = vmor %vm34_vm11, %vm36_vm15  ;;  %p172_p2 = scmp.ne.s32.totalorder %s107_s4, %s171_s5  ;;  %p176_p3 = scmp.lt.s32.totalorder %s107_s4, %s107_s4 }
  0x2a   :  { %vm55_vm13 = vmor %vm50_vm9, %vm54_vm12  ;;  %vm205_vm9 = vmmov 1   ;;  %p177_p4 = scmp.lt.s32.totalorder %s175_s6, %s171_s5 }
  0x2b   :  { %vm79_vm14 = vcmp.ne.s32.totalorder %v78_v33, 0  ;;  %vm60_vm0 = vmand %vm55_vm13, %vm59_vm10 }
  0x2c   :  { %v61_v34 = vsel %vm60_vm0, 1, %v203_v9  ;;  %vm80_vm1 = vmor %vm76_vm8, %vm79_vm14  ;;  %p178_p5 = por %p177_p4, %p176_p3 }
  0x2d   :  { %v62_v35 = vrot.slane %v61_v34, 1  ;;  %v82_v36 = vsel %vm80_vm1, 1, %v203_v9 }
  0x2e   :  { %v83_v37 = vrot.slane %v82_v36, 2  ;;  %p179_p6 = pnand %p178_p5, %p172_p2 }
  0x2f   :  { %vm63_vm3 = vcmp.ne.s32.totalorder %v62_v35, 0 }
  0x30   :  { %vm64_vm4 = vmor %vm60_vm0, %vm63_vm3  ;;  %vm84_vm5 = vcmp.ne.s32.totalorder %v83_v37, 0 }
  0x31   :  { %vm81_vm6 = vmor %vm37_vm2, %vm64_vm4 }
  0x32   :  { %vm85_vm7 = vmor %vm81_vm6, %vm84_vm5 }
  0x33   :  { %vm86_vm12 = vmxor %vm85_vm7, %vm205_vm9 }
  0x34   :  { %v88_v38 = vsel %vm86_vm12, 1, %v203_v9 }
  0x35   :  { %89 = vst [vmem:[#allocation6] sm:$0x1] %v88_v38 }
  0x36   :  { %182 = shalt.err (!%p179_p6)
}
  0x37   :  { %s183_s9 = scalar_lea.hbm %s287_s2, 16 }
  0x38   :  { %p184_p7 = scmp.ne.s32.totalorder %s287_s2, %s183_s9  ;;  %p187_p8 = scmp.lt.u32.totalorder %s183_s9, %s287_s2 }
  0x3a   :  { %p189_p9 = pnand %p187_p8, %p184_p7 }
  0x3c   :  { %192 = shalt.err (!%p189_p9)
}
  0x3d   :  { %109 = dma.vmem_to_hbm [thread:$0]  %s107_s4, 16, %s287_s2, [#allocation7]  }
  0x3e   :  { %195 = dma.done.wait [#allocation4], 64  }
  0x3f   :  { %196 = vsyncadd [#allocation4], 4294967232 }
  0x40   :  { %197 = dma.done.wait [#allocation7], 16  }
  0x41   :  { %198 = vsyncadd [#allocation7], 4294967280 }
  0x42   :  { %116 = vsyncpa [#allocation3], 1 }
  0x43   :  { %117 = vsyncpa [#allocation4], 1 }
  0x44   :  { %118 = vsyncpa [#allocation7], 1 }

</bundles_post_ra>
